<compile_context>
chip_gen: v7x
topology: tpu7x:2x2x1
jax: 0.10.0
libtpu: 0.0.40
codegen_flags: <defaults>
</compile_context>

<pallas_src>
import functools

import jax
import jax.numpy as jnp
from jax.experimental import pallas as pl
from jax.experimental.pallas import tpu as pltpu


def _rope_kernel(pos_ref, inv_ref, q_ref, o_ref, *, half, cs_dtype):
    # pos_ref : (tS, 1)   f32 positions for this sequence tile
    # inv_ref : (1, D)    f32 inv-freqs, first D/2 lanes pre-negated (sign fold)
    # q_ref   : (H, tS, D)
    # o_ref   : (H, tS, D)
    freqs = pos_ref[...] * inv_ref[...]                 # (tS, D) f32 (keep f32!)

    # cos is even -> unaffected by the sign fold; sin picks up rotate_half's sign.
    cos = jnp.cos(freqs).astype(cs_dtype)[None]         # (1, tS, D)
    sin = jnp.sin(freqs).astype(cs_dtype)[None]         # (1, tS, D), signed

    q = q_ref[...]                                      # (H, tS, D)
    # rotate_half without the negate (sign already folded into sin):
    # concat(x2, x1) along the lane axis.
    rot = jnp.concatenate([q[..., half:], q[..., :half]], axis=-1)

    o_ref[...] = (q * cos + rot * sin).astype(o_ref.dtype)


def _vmem_budgets():
    """(per-buffer block budget, vmem_limit_bytes), generation-gated."""
    try:
        vmem = int(pltpu.get_tpu_info().vmem_capacity_bytes)
    except Exception:
        vmem = 64 * 1024 * 1024           # be conservative (v7x-sized) if unknown
    if vmem >= 100 * 1024 * 1024:         # v5e / v6e: 128 MiB physical VMEM
        return 16 * 1024 * 1024, 96 * 1024 * 1024
    return 8 * 1024 * 1024, 48 * 1024 * 1024   # v7x: 64 MiB physical VMEM


def _pick_seq_tile(S, H, D, itemsize, B, budget):
    """Largest divisor of S whose q-block fits the budget, preferring sublane
    alignment and an even >=2 total grid-step count (v7x megacore)."""
    divisors = [d for d in range(1, S + 1) if S % d == 0]
    fitting = [d for d in divisors if H * d * D * itemsize <= budget] or [1]
    aligned = [d for d in fitting if d % 8 == 0] or fitting

    def steps(t):
        return B * (S // t)

    even2 = [d for d in aligned if steps(d) >= 2 and steps(d) % 2 == 0]
    two = [d for d in aligned if steps(d) >= 2]
    pool = even2 or two or aligned
    return max(pool)


def rope_forward(value_states, query_states, position_ids, rope_theta=10000.0):
    """Pallas implementation of RoPE.forward.

    value_states : [B, H, S, D] (only its dtype is used, as in the PyTorch module)
    query_states : [B, H, S, D]
    position_ids : [B, S] (int)
    returns rotated query_states [B, H, S, D]
    """
    B, H, S, D = query_states.shape
    assert D % 2 == 0, "head_dim must be even for RoPE"
    half = D // 2

    # inv_freq with rotate_half's sign folded into the first D/2 lanes.
    inv_freq = 1.0 / (rope_theta ** (jnp.arange(0, D, 2, dtype=jnp.float32) / D))  # (D/2,)
    inv_signed = jnp.concatenate([-inv_freq, inv_freq])[None, :]                   # (1, D) f32

    # Tiny position side-stream: 4 B per (b, s) instead of 4*D B per (b, s).
    pos = position_ids.astype(jnp.float32)[:, :, None]                             # (B, S, 1)

    itemsize = jnp.dtype(query_states.dtype).itemsize
    budget, vmem_limit = _vmem_budgets()
    tS = _pick_seq_tile(S, H, D, itemsize, B, budget)
    grid = (B, S // tS)

    kernel = functools.partial(_rope_kernel, half=half, cs_dtype=value_states.dtype)

    return pl.pallas_call(
        kernel,
        out_shape=jax.ShapeDtypeStruct((B, H, S, D), query_states.dtype),
        grid_spec=pltpu.PrefetchScalarGridSpec(
            num_scalar_prefetch=0,
            grid=grid,
            in_specs=[
                pl.BlockSpec((None, tS, 1), lambda b, s: (b, s, 0)),        # positions
                pl.BlockSpec((1, D), lambda b, s: (0, 0)),                  # signed inv_freq (resident)
                pl.BlockSpec((None, H, tS, D), lambda b, s: (b, 0, s, 0)),  # q
            ],
            out_specs=pl.BlockSpec((None, H, tS, D), lambda b, s: (b, 0, s, 0)),
        ),
        compiler_params=pltpu.CompilerParams(
            dimension_semantics=("parallel", "parallel"),
            vmem_limit_bytes=vmem_limit,
        ),
    )(pos, inv_signed, query_states)


def rope_reference(value_states, query_states, position_ids, rope_theta=10000.0):
    """Plain-JAX reference mirroring the PyTorch module."""
    B, H, S, D = query_states.shape
    inv_freq = 1.0 / (rope_theta ** (jnp.arange(0, D, 2, dtype=jnp.float32) / D))
    freqs = position_ids.astype(jnp.float32)[:, :, None] * inv_freq[None, None, :]  # (B,S,D/2)
    emb = jnp.concatenate([freqs, freqs], axis=-1)             # (B, S, D)
    cos = jnp.cos(emb).astype(value_states.dtype)[:, None]     # (B, 1, S, D)
    sin = jnp.sin(emb).astype(value_states.dtype)[:, None]
    x1 = query_states[..., : D // 2]
    x2 = query_states[..., D // 2:]
    rot = jnp.concatenate([-x2, x1], axis=-1)
    return query_states * cos + rot * sin


if __name__ == "__main__":
    # Small shapes consistent with the module (head_dim = 8192/64 = 128),
    # but fewer heads / shorter sequence for a quick test.
    B, H, S, D = 2, 4, 8, 128

    key = jax.random.PRNGKey(0)
    kq, kv = jax.random.split(key)
    query_states = jax.random.normal(kq, (B, H, S, D), dtype=jnp.float32)
    value_states = jax.random.normal(kv, (B, H, S, D), dtype=jnp.float32)
    position_ids = jnp.broadcast_to(jnp.arange(S, dtype=jnp.int32), (B, S))

    out = jax.block_until_ready(rope_forward(value_states, query_states, position_ids))

    ref = rope_reference(value_states, query_states, position_ids)
    assert out.shape == (B, H, S, D)
    assert jnp.allclose(out, ref, atol=1e-4, rtol=1e-4), "mismatch vs reference"

    print("KERNEL_OK")
</pallas_src>

<mosaic_0001>
module attributes {stable_mosaic.version = 11 : i64} {
  func.func @_rope_kernel(%arg0: i32, %arg1: i32, %arg2: memref<1x8x1xf32, #tpu.memory_space<vmem>>, %arg3: memref<1x128xf32, #tpu.memory_space<vmem>>, %arg4: memref<1x4x8x128xf32, #tpu.memory_space<vmem>>, %arg5: memref<1x4x8x128xf32, #tpu.memory_space<vmem>>) attributes {dimension_semantics = [#tpu.dimension_semantics<parallel>, #tpu.dimension_semantics<parallel>], iteration_bounds = array<i64: 2, 1>, scalar_prefetch = 0 : i64, scratch_operands = 0 : i64, tpu.core_type = #tpu.core_type<tc>, window_params = [{transform_indices = @transform_0, window_bounds = array<i64: 1, 8, 1>}, {pipeline_mode = #tpu.pipeline_mode<synchronous>, transform_indices = @transform_1, window_bounds = array<i64: 1, 128>}, {transform_indices = @transform_2, window_bounds = array<i64: 1, 4, 8, 128>}, {transform_indices = @transform_3, window_bounds = array<i64: 1, 4, 8, 128>}]} {
    %c0 = arith.constant 0 : index
    %c0_0 = arith.constant 0 : index
    %c0_1 = arith.constant 0 : index
    %0 = vector.load %arg2[%c0, %c0_0, %c0_1] : memref<1x8x1xf32, #tpu.memory_space<vmem>>, vector<1x8x1xf32>
    %1 = vector.shape_cast %0 : vector<1x8x1xf32> to vector<8x1xf32>
    %c0_2 = arith.constant 0 : index
    %c0_3 = arith.constant 0 : index
    %2 = vector.load %arg3[%c0_2, %c0_3] : memref<1x128xf32, #tpu.memory_space<vmem>>, vector<1x128xf32>
    %3 = vector.broadcast %1 : vector<8x1xf32> to vector<8x128xf32>
    %4 = vector.broadcast %2 : vector<1x128xf32> to vector<8x128xf32>
    %5 = arith.mulf %3, %4 : vector<8x128xf32>
    %6 = math.cos %5 : vector<8x128xf32>
    %7 = vector.shape_cast %6 : vector<8x128xf32> to vector<1x8x128xf32>
    %8 = math.sin %5 : vector<8x128xf32>
    %9 = vector.shape_cast %8 : vector<8x128xf32> to vector<1x8x128xf32>
    %c0_4 = arith.constant 0 : index
    %c0_5 = arith.constant 0 : index
    %c0_6 = arith.constant 0 : index
    %c0_7 = arith.constant 0 : index
    %10 = vector.load %arg4[%c0_4, %c0_5, %c0_6, %c0_7] : memref<1x4x8x128xf32, #tpu.memory_space<vmem>>, vector<1x4x8x128xf32>
    %11 = vector.shape_cast %10 : vector<1x4x8x128xf32> to vector<4x8x128xf32>
    %12 = vector.extract_strided_slice %11 {offsets = [0, 0, 64], sizes = [4, 8, 64], strides = [1, 1, 1]} : vector<4x8x128xf32> to vector<4x8x64xf32>
    %13 = vector.extract_strided_slice %11 {offsets = [0, 0, 0], sizes = [4, 8, 64], strides = [1, 1, 1]} : vector<4x8x128xf32> to vector<4x8x64xf32>
    %14 = tpu.concatenate %12, %13 in 2 : vector<4x8x64xf32>, vector<4x8x64xf32> -> vector<4x8x128xf32>
    %15 = vector.broadcast %7 : vector<1x8x128xf32> to vector<4x8x128xf32>
    %16 = arith.mulf %11, %15 : vector<4x8x128xf32>
    %17 = vector.broadcast %9 : vector<1x8x128xf32> to vector<4x8x128xf32>
    %18 = arith.mulf %14, %17 : vector<4x8x128xf32>
    %19 = arith.addf %16, %18 : vector<4x8x128xf32>
    %c0_8 = arith.constant 0 : index
    %c0_9 = arith.constant 0 : index
    %c0_10 = arith.constant 0 : index
    %c0_11 = arith.constant 0 : index
    %20 = vector.load %arg5[%c0_8, %c0_9, %c0_10, %c0_11] : memref<1x4x8x128xf32, #tpu.memory_space<vmem>>, vector<1x4x8x128xf32>
    %21 = vector.shape_cast %20 : vector<1x4x8x128xf32> to vector<4x8x128xf32>
    %22 = vector.shape_cast %19 : vector<4x8x128xf32> to vector<1x4x8x128xf32>
    tpu.vector_store %arg5[%c0_8, %c0_9, %c0_10, %c0_11], %22 {strides = array<i32>} : memref<1x4x8x128xf32, #tpu.memory_space<vmem>>, vector<1x4x8x128xf32>,
    return
  }
  func.func @transform_0(%arg0: i32, %arg1: i32) -> (i32, i32, i32) {
    %c0_i32 = arith.constant 0 : i32
    %c0_i32_0 = arith.constant 0 : i32
    return %arg0, %arg1, %c0_i32 : i32, i32, i32
  }
  func.func @transform_1(%arg0: i32, %arg1: i32) -> (i32, i32) {
    %c0_i32 = arith.constant 0 : i32
    %c0_i32_0 = arith.constant 0 : i32
    %c0_i32_1 = arith.constant 0 : i32
    return %c0_i32, %c0_i32_0 : i32, i32
  }
  func.func @transform_2(%arg0: i32, %arg1: i32) -> (i32, i32, i32, i32) {
    %c0_i32 = arith.constant 0 : i32
    %c0_i32_0 = arith.constant 0 : i32
    %c0_i32_1 = arith.constant 0 : i32
    return %arg0, %c0_i32, %arg1, %c0_i32_0 : i32, i32, i32, i32
  }
  func.func @transform_3(%arg0: i32, %arg1: i32) -> (i32, i32, i32, i32) {
    %c0_i32 = arith.constant 0 : i32
    %c0_i32_0 = arith.constant 0 : i32
    %c0_i32_1 = arith.constant 0 : i32
    return %arg0, %c0_i32, %arg1, %c0_i32_0 : i32, i32, i32, i32
  }
}

</mosaic_0001>

<bundles_post_ra>
// kernel: tpu_custom_call.1
= control target key start
LH: loop header
LB: loop body
LE: loop exit
PB: predicated region body
PF: predicated region fallthrough
CT: control target
= control target key end

     0   :  { %8 = vsyncpa [#allocation3], 0  ;;  %s1088_s0 = inlined_call_operand.vmem [shape: f32[2,8,1], index: 0, kind: input, shape index: {}]   ;;  %s1089_s1 = inlined_call_operand.vmem [shape: f32[1,128], index: 1, kind: input, shape index: {}]   ;;  %s1090_s2 = inlined_call_operand.hbm [shape: f32[2,4,8,128], index: 2, kind: input, shape index: {}]   ;;  %s1091_s3 = inlined_call_operand.hbm [shape: f32[2,4,8,128], index: 3, kind: output, shape index: {}]  }
   0x1   :  { %10 = vsyncpa [#allocation3 + $0x1], 0 }
   0x2   :  { %11 = vsyncpa [#allocation4], 0 }
   0x3   :  { %13 = vsyncpa [#allocation4 + $0x1], 0  ;;  %s864_s12 = smov 0   ;;  %s866_s13 = smov 0  }
   0x4   :  { %s868_s14 = smov 0   ;;  %s870_s15 = smov 0  }
   0x5   :  { %s872_s16 = smov 0   ;;  %s874_s17 = smov 0  }
   0x6 LB: > { %s606_s18 = sadd.s32 4294967295, %s828_s17   ;;  %s607_s19 = sadd.s32 4294967294, %s828_s17   ;;  %s828_s17 = sphi %s874_s17, %s19_s17   ;;  %s824_s16 = sphi %s872_s16, %s1106_s16   ;;  %s820_s15 = sphi %s870_s15, %s1105_s15   ;;  %s816_s14 = sphi %s868_s14, %s1104_s14   ;;  %s812_s13 = sphi %s866_s13, %s1103_s13   ;;  %s808_s12 = sphi %s864_s12, %s1102_s12  }
   0x7   : > { %s31_s20 = sadd.s32 1, %s824_s16  ;;  %s89_s21 = sadd.s32 1, %s816_s14 }
   0x8   : > { %p33_p0 = scmp.ge.s32.totalorder %s31_s20, 2  ;;  %p96_p1 = scmp.ne.s32.totalorder %s816_s14, %s812_s13 }
   0x9   : > { %p97_p2 = scmp.eq.s32.totalorder %s828_s17, 0  ;;  %p102_p3 = scmp.ne.s32.totalorder %s812_s13, %s808_s12 }
   0xa   : > { %s1108_s20 = smov (%p33_p0, %s31_s20), 0  ;;  %p103_p5 = scmp.eq.s32.totalorder %s606_s18, 0 }
   0xb   : > { %p905_p4 = por %p97_p2, %p96_p1  ;;  %s84_s23 = ssub.s32 %s824_s16, %s1108_s20 }
   0xc   : > { %p128_p6 = scmp.eq.s32.totalorder %s606_s18, 1  ;;  %p87_p7 = scmp.eq.s32.totalorder %s84_s23, 0 }
   0xd   : > { %p911_p8 = por %p103_p5, %p102_p3  ;;  %p134_p10 = scmp.eq.s32.totalorder %s607_s19, 1 }
   0xe   : > { %p915_p9 = por %p128_p6, %p96_p1  ;;  %p649_p13 = scmp.lt.s32.totalorder %s828_s17, 2 }
   0xf   : > { %s920_s26 = scalar_select %p87_p7, %s816_s14, %s89_s21  }
  0x10   : > { %s1095_s25 = scalar_select %p915_p9, 1, 0 }
  0x11   : > { %p922_p11 = por %p134_p10, %p102_p3  ;;  %s167_s28 = sand.u32 1, %s816_s14  }
  0x12   : > { %s610_s29 = sshll.u32 %s167_s28, 5  ;;  %s631_s30 = sshll.u32 %s824_s16, 9 }
  0x13   : > { %s1096_s27 = scalar_select %p922_p11, 1, 0 }
  0x14   : > { %s933_s6 = scalar_lea.hbm %s1090_s2, %s631_s30  ;;  %s171_s7 = scalar_lea.vmem [#allocation2], %s610_s29 }
  0x15   : > { %s179_s8 = sshll.u32 %s171_s7, 4  ;;  %p939_p0 = pnand %p649_p13, %p905_p4  ;;  %s935_s8 = int_to_ptr.vmem [resolvable:$true] %s179_s8 }
  0x16   : > { %s944_s10 = scalar_lea.sflag [#allocation3], %s167_s28  ;;  %s716_s11 = scalar_lea.hbm %s933_s6, 512 }
  0x17   : > { %p717_p2 = scmp.ne.s32.totalorder %s933_s6, %s716_s11  ;;  %p718_p3 = pneg %p939_p0 }
  0x18   : > { %s721_s21 = scalar_lea.hbm %s1090_s2, 1024  ;;  %p722_p4 = scmp.lt.u32.totalorder %s933_s6, %s1090_s2 }
  0x19   : > { %p719_p5 = pnand %p718_p3, %p717_p2  ;;  %p723_p7 = scmp.lt.u32.totalorder %s721_s21, %s716_s11 }
  0x1a   : > { %p725_p13 = scmp.lt.u32.totalorder %s716_s11, %s933_s6 }
  0x1b   : > { %p720_p6 = pneg %p719_p5  ;;  %p724_p10 = por %p723_p7, %p722_p4 }
  0x1d   : > { %p726_p12 = por %p725_p13, %p724_p10 }
  0x1f   : > { %p727_p1 = pnand %p726_p12, %p720_p6 }
  0x21   : > { %730 = shalt.err (!%p727_p1)
}
  0x22   : > { %s731_s28 = scalar_lea.vmem %s935_s8, 512  ;;  %s830_s29 = smov [#allocation2]  }
  0x23   : > { %p732_p2 = scmp.ne.s32.totalorder %s935_s8, %s731_s28  ;;  %s736_s30 = sshll.u32 %s830_s29, 4  ;;  %s737_s30 = int_to_ptr.vmem [resolvable:$false] %s736_s30 }
  0x24   : > { %s738_s4 = scalar_lea.vmem %s737_s30, 1024  ;;  %p739_p9 = scmp.lt.s32.totalorder %s935_s8, %s737_s30 }
  0x25   : > { %p734_p5 = pnand %p732_p2, %p718_p3  ;;  %p740_p4 = scmp.lt.s32.totalorder %s738_s4, %s731_s28 }
  0x27   : > { %p735_p11 = pneg %p734_p5  ;;  %p741_p7 = por %p740_p4, %p739_p9 }
  0x29   : > { %p742_p10 = pnand %p741_p7, %p735_p11 }
  0x2b   : > { %745 = shalt.err (!%p742_p10)
}
  0x2c   : > { %s831_s5 = smov 128   ;;  %s832_s7 = smov 8  }
  0x2d   : > { %644 = dma.hbm_to_vmem [thread:$0]  (!%p939_p0), %s933_s6, 512, %s935_s8, %s944_s10, %s831_s5, %s831_s5, %s832_s7  }
  0x2e   : > { %p187_p12 = scmp.lt.s32.totalorder %s828_s17, 3  ;;  %p1098_p1 = scmp.ge.s32.totalorder %s828_s17, 1 }
  0x30   : > { %p188_p3 = pnand %p1098_p1, %p187_p12 }
  0x31   : > { %s976_s11 = sand.u32 (!%p188_p3), 1, %s812_s13  }
  0x32   : > { %191 = sbr.rel (%p188_p3) target bundleno = 294 (0x126), region = 32  ;;  %s614_s18 = sshll.u32 (!%p188_p3), %s976_s11, 5 }
  0x33   : > { %s194_s19 = scalar_lea.sflag (!%p188_p3), [#allocation3], %s976_s11  ;;  %s197_s21 = scalar_lea.vmem (!%p188_p3), [#allocation2], %s614_s18 }
  0x39   : > { %799 = dma.done.wait (%p911_p8), %s194_s19, 512  }
  0x3a   : > { %801 = vsyncadd (%p911_p8), %s194_s19, 4294966784  ;;  %p227_p9 = scmp.lt.s32.totalorder %s820_s15, 1  ;;  %v833_v0 = vmov 0   ;;  %v991_v2 = vld [vmem:[%s197_s21 + $0x8] sm:$0xff]  ;;  %s834_s23 = smov 64   ;;  %v994_v3 = vld [vmem:[%s197_s21] sm:$0xff] }
  0x3b   : > { %711 = vset.pattern.permute.xlu0 %v833_v0  ;;  %465 = vrot.lane.b32.xlu1 %v991_v2, %s834_s23  ;;  %v996_v4 = vld [vmem:[%s197_s21 + $0x10] sm:$0xff]  ;;  %v1000_v5 = vld [vmem:[%s197_s21 + $0x18] sm:$0xff]  ;;  %v835_v19 = vmov 683565275   ;;  %v836_v21 = vmov 2475754826  }
  0x3c   : > { %s228_s6 = scalar_select %p227_p9, %s820_s15, 1  ;;  %v617_v6 = vld [vmem:[%s1089_s1] ss:$0 sm:$0xff]  ;;  %v837_v24 = vmov 2131351028  }
  0x3d   : > { %v838_v27 = vmov 2102212464   ;;  %v839_v30 = vmov 920167782   ;;  %v840_v33 = vmov 1326507024  }
  0x3e   : > { %s616_s8 = sshll.u32 %s228_s6, 3  ;;  %s226_s29 = scalar_lea.vmem [#allocation5], %s614_s18 }
  0x3f   : > { %s233_s22 = scalar_lea.vmem %s1088_s0, %s616_s8  ;;  %467 = vrot.lane.b32.xlu1 %v996_v4, %s834_s23  ;;  %s506_s30 = sshll.u32 %s226_s29, 4  ;;  %s1032_s30 = int_to_ptr.vmem [resolvable:$true] %s506_s30 }
  0x40   : > { %v234_v1 = vld [vmem:[%s233_s22] sm:$0xff]  ;;  %s632_s4 = sshll.u32 %s820_s15, 9  ;;  %s492_s18 = scalar_lea.sflag [#allocation4], %s976_s11 }
  0x41   : > { %238 = vperm.xlu0 %711, %v234_v1   ;;  %s1039_s7 = scalar_lea.hbm %s1091_s3, %s632_s4  ;;  %s746_s19 = scalar_lea.vmem %s1032_s30, 512 }
  0x42   : > { %p747_p8 = scmp.ne.s32.totalorder %s1032_s30, %s746_s19  ;;  %p1099_p11 = scmp.ne.s32.totalorder %s1095_s25, 0 }
  0x43   : > { %s841_s21 = smov [#allocation5]  }
  0x44   : > { %p748_p0 = pnand %p747_p8, %p1099_p11  ;;  %s750_s6 = sshll.u32 %s841_s21, 4  ;;  %s751_s6 = int_to_ptr.vmem [resolvable:$false] %s750_s6 }
  0x45   : > { %463 = vrot.lane.b32.xlu0 %v994_v3, %s834_s23  ;;  %s752_s8 = scalar_lea.vmem %s751_s6, 1024  ;;  %p753_p13 = scmp.lt.s32.totalorder %s1032_s30, %s751_s6 }
  0x46   : > { %p749_p6 = pneg %p748_p0  ;;  %p754_p2 = scmp.lt.s32.totalorder %s752_s8, %s746_s19 }
  0x48   : > { %p755_p5 = por %p754_p2, %p753_p13 }
  0x49   : > { %469 = vrot.lane.b32.xlu0 %v1000_v5, %s834_s23 }
  0x4a   : > { %p756_p4 = pnand %p755_p5, %p749_p6 }
  0xc0   : > { %v239_v7 = vpop.permute.xlu0 %238 }
  0xc1   : > { %v1006_v8 = vmul.f32 %v617_v6, %v239_v7 }
  0xc3   : > { %v251_v9 = vand.u32 2139095040, %v1006_v8  ;;  %v248_v13 = vand.u32 2147483647, %v1006_v8  ;;  %vm250_vm7 = vcmp.lt.s32.totalorder %v1006_v8, 0  ;;  %vm340_vm15 = vweird.f32 %v1006_v8 }
  0xc5   : > { %v252_v10 = vshrl.u32 %v251_v9, 23  ;;  %v255_v16 = vand.u32 8388607, %v248_v13  ;;  %vm249_vm8 = vcmp.le.f32.partialorder %v248_v13, 0.7853982 }
  0xc7   : > { %v618_v11 = vadd.s32 4294967169, %v252_v10  ;;  %v256_v35 = vor.u32 8388608, %v255_v16 }
  0xc9   : > { %v258_v12 = vadd.s32 1, %v618_v11  ;;  %v296_v49 = vshll.u32 %v256_v35, 8  ;;  %v466_v35 = vpop.permute.xlu1 %465 }
  0xcb   : > { %vm259_vm0 = vcmp.gt.s32.totalorder %v258_v12, 0 }
  0xcc   : > { %v260_v14 = vsel %vm259_vm0, %v258_v12, 0 }
  0xcd   : > { %v262_v15 = vand.u32 31, %v260_v14  ;;  %v261_v18 = vshrl.u32 %v260_v14, 5 }
  0xcf   : > { %v263_v17 = vsub.s32 32, %v262_v15  ;;  %v265_v20 = vshll.u32 %v835_v19, %v262_v15  ;;  %v268_v22 = vshll.u32 %v836_v21, %v262_v15  ;;  %v271_v26 = vshll.u32 %v837_v24, %v262_v15 }
  0xd0   : > { %v274_v29 = vshll.u32 %v838_v27, %v262_v15  ;;  %v277_v32 = vshll.u32 %v839_v30, %v262_v15  ;;  %vm280_vm1 = vcmp.lt.s32.totalorder %v261_v18, 1  ;;  %vm283_vm2 = vcmp.lt.s32.totalorder %v261_v18, 4 }
  0xd1   : > { %v266_v23 = vshrl.u32 %v836_v21, %v263_v17  ;;  %v269_v25 = vshrl.u32 %v837_v24, %v263_v17  ;;  %v272_v28 = vshrl.u32 %v838_v27, %v263_v17  ;;  %v275_v31 = vshrl.u32 %v839_v30, %v263_v17 }
  0xd2   : > { %v278_v34 = vshrl.u32 %v840_v33, %v263_v17  ;;  %v264_v44 = vshrl.u32 %v835_v19, %v263_v17  ;;  %vm282_vm3 = vcmp.lt.s32.totalorder %v261_v18, 3  ;;  %vm281_vm4 = vcmp.lt.s32.totalorder %v261_v18, 2 }
  0xd3   : > { %v267_v36 = vor.u32 %v266_v23, %v265_v20  ;;  %v270_v37 = vor.u32 %v269_v25, %v268_v22  ;;  %v273_v38 = vor.u32 %v272_v28, %v271_v26  ;;  %v276_v39 = vor.u32 %v275_v31, %v274_v29 }
  0xd4   : > { %v279_v40 = vor.u32 %v278_v34, %v277_v32 }
  0xd5   : > { %v285_v41 = vsel %vm283_vm2, %v273_v38, 2102212464  ;;  %v288_v42 = vsel %vm280_vm1, %v267_v36, %v270_v37  ;;  %v292_v43 = vsel %vm280_vm1, %v270_v37, %v273_v38  ;;  %v289_v45 = vsel %vm283_vm2, %v276_v39, 920167782 }
  0xd6   : > { %v293_v46 = vsel %vm283_vm2, %v279_v40, 1326507024  ;;  %v290_v47 = vsel %vm282_vm3, %v273_v38, %v289_v45  ;;  %v284_v50 = vsel %vm280_vm1, %v264_v44, %v267_v36  ;;  %v286_v51 = vsel %vm282_vm3, %v270_v37, %v285_v41  ;;  %v464_v36 = vpop.permute.xlu0 %463 }
  0xd7   : > { %v294_v48 = vsel %vm282_vm3, %v276_v39, %v293_v46  ;;  %v291_v52 = vsel %vm281_vm4, %v288_v42, %v290_v47  ;;  %v287_v58 = vsel %vm281_vm4, %v284_v50, %v286_v51  ;;  %v468_v46 = vpop.permute.xlu1 %467 }
  0xd8   : > { %v295_v53 = vsel %vm281_vm4, %v292_v43, %v294_v48  ;;  %v1015_v56 = vmul.u32.u64.low %v296_v49, %v291_v52  ;;  %v1016_v57 = vmul.u32.u64.high %v296_v49, %v291_v52, %v1015_v56  ;;  %v303_v60 = vmul.u32 %v296_v49, %v287_v58 }
  0xd9   : > { %v1012_v54 = vmul.u32.u64.low %v296_v49, %v295_v53  ;;  %v1013_v55 = vmul.u32.u64.high %v296_v49, %v295_v53, %v1012_v54 }
  0xda   : > { %v306_v59 = vadd.s32 1, %v1016_v57  ;;  %v470_v47 = vpop.permute.xlu0 %469 }
  0xdb   : > { %vm305_vm5 = vc.u32 %v1013_v55, %v1015_v56  ;;  %v304_v14 = vadd.s32 %v1015_v56, %v1013_v55 }
  0xdc   : > { %v307_v61 = vsel %vm305_vm5, %v306_v59, %v1016_v57 }
  0xdd   : > { %v308_v62 = vadd.s32 %v307_v61, %v303_v60 }
  0xdf   : > { %v309_v63 = vadd.s32 536870912, %v308_v62 }
  0xe1   : > { %v310_v0 = vshrl.u32 %v309_v63, 30 }
  0xe3   : > { %v311_v1 = vshll.u32 %v310_v0, 30  ;;  %v334_v26 = vsub.s32 4, %v310_v0 }
  0xe5   : > { %v312_v6 = vsub.s32 %v308_v62, %v311_v1  ;;  %v335_v29 = vsel %vm250_vm7, %v334_v26, %v310_v0 }
  0xe6   : > { %v337_v31 = vsel %vm249_vm8, 0, %v335_v29 }
  0xe7   : > { %v314_v7 = vsub.s32 0, %v312_v6  ;;  %v444_v32 = vadd.s32 3, %v337_v31  ;;  %v341_v33 = vand.u32 3, %v337_v31 }
  0xe9   : > { %v619_v9 = vmin.u32 %v314_v7, %v312_v6  ;;  %v445_v34 = vand.u32 3, %v444_v32  ;;  %vm346_vm9 = vcmp.eq.s32.totalorder %v341_v33, 2  ;;  %vm343_vm11 = vcmp.eq.s32.totalorder %v341_v33, 0 }
  0xea   : > { %vm342_vm13 = vcmp.lt.s32.totalorder %v341_v33, 2 }
  0xeb   : > { %v316_v10 = vclz %v619_v9  ;;  %vm450_vm10 = vcmp.eq.s32.totalorder %v445_v34, 2  ;;  %vm447_vm12 = vcmp.eq.s32.totalorder %v445_v34, 0  ;;  %vm446_vm14 = vcmp.lt.s32.totalorder %v445_v34, 2 }
  0xed   : > { %v620_v11 = vadd.s32 4294967294, %v316_v10 }
  0xef   : > { %vm621_vm6 = vcmp.lt.s32.totalorder %v620_v11, 0 }
  0xf0   : > { %v319_v12 = vsel %vm621_vm6, 0, %v620_v11 }
  0xf1   : > { %v320_v15 = vsub.s32 32, %v319_v12  ;;  %v324_v16 = vsub.s32 4294967266, %v319_v12  ;;  %v321_v17 = vshll.u32 %v312_v6, %v319_v12 }
  0xf3   : > { %v322_v18 = vshrl.u32 %v304_v14, %v320_v15  ;;  %v325_v19 = vadd.s32 127, %v324_v16 }
  0xf5   : > { %v323_v20 = vor.u32 %v322_v18, %v321_v17  ;;  %v326_v21 = vshll.u32 %v325_v19, 23 }
  0xf7   : > { %v327_v22 = vor.u32 4788187, %v326_v21  ;;  %v330_v24 = vcvt.s32.f32 %v323_v20 }
  0xf9   : > { %v328_v23 = vand.u32 2147483647, %v327_v22 }
  0xfb   : > { %v331_v25 = vmul.f32 %v330_v24, %v328_v23 }
  0xfd   : > { %v332_v27 = vxor.u32 2147483648, %v331_v25 }
  0xff   : > { %v333_v28 = vsel %vm250_vm7, %v332_v27, %v331_v25 }
 0x100   : > { %v336_v30 = vsel %vm249_vm8, %v1006_v8, %v333_v28 }
 0x101   : > { %712 = vcosq.f32 %v336_v30 }
 0x102   : > { %714 = vsinq.f32 %v336_v30 }
 0x10b   : > { %v713_v37 = vpop.eup %712 }
 0x10c   : > { %v715_v38 = vpop.eup %714  ;;  %v347_v39 = vxor.u32 2147483648, %v713_v37 }
 0x10d   : > { %v344_v40 = vxor.u32 2147483648, %v715_v38 }
 0x10e   : > { %v348_v13 = vsel %vm346_vm9, %v347_v39, %v715_v38  ;;  %v452_v41 = vsel %vm450_vm10, %v347_v39, %v715_v38 }
 0x10f   : > { %v345_v42 = vsel %vm343_vm11, %v713_v37, %v344_v40  ;;  %v449_v43 = vsel %vm447_vm12, %v713_v37, %v344_v40 }
 0x110   : > { %v349_v44 = vsel %vm342_vm13, %v345_v42, %v348_v13  ;;  %v453_v45 = vsel %vm446_vm14, %v449_v43, %v452_v41 }
 0x111   : > { %v350_v48 = vsel %vm340_vm15, nan, %v349_v44  ;;  %v454_v49 = vsel %vm340_vm15, nan, %v453_v45 }
 0x112   : > { %v476_v50 = vmul.f32 %v991_v2, %v350_v48  ;;  %v480_v51 = vmul.f32 %v466_v35, %v454_v49  ;;  %v475_v52 = vmul.f32 %v994_v3, %v350_v48  ;;  %v479_v53 = vmul.f32 %v464_v36, %v454_v49 }
 0x113   : > { %v477_v8 = vmul.f32 %v996_v4, %v350_v48  ;;  %v481_v54 = vmul.f32 %v468_v46, %v454_v49  ;;  %v478_v55 = vmul.f32 %v1000_v5, %v350_v48  ;;  %v482_v56 = vmul.f32 %v470_v47, %v454_v49 }
 0x114   : > { %v484_v57 = vadd.f32 %v480_v51, %v476_v50  ;;  %v483_v58 = vadd.f32 %v479_v53, %v475_v52 }
 0x115   : > { %v485_v2 = vadd.f32 %v481_v54, %v477_v8  ;;  %v486_v3 = vadd.f32 %v482_v56, %v478_v55 }
 0x116   : > { %488 = vst [vmem:[%s226_s29 + $0x8] sm:$0xff] %v484_v57  ;;  %487 = vst [vmem:[%s226_s29] sm:$0xff] %v483_v58 }
 0x117   : > { %489 = vst [vmem:[%s226_s29 + $0x10] sm:$0xff] %v485_v2  ;;  %490 = vst [vmem:[%s226_s29 + $0x18] sm:$0xff] %v486_v3 }
 0x118   : > { %759 = shalt.err (!%p756_p4)
}
 0x119   : > { %s760_s9 = scalar_lea.hbm %s1039_s7, 512  ;;  %s764_s23 = scalar_lea.hbm %s1091_s3, 1024 }
 0x11a   : > { %p761_p7 = scmp.ne.s32.totalorder %s1039_s7, %s760_s9  ;;  %p765_p1 = scmp.lt.u32.totalorder %s1039_s7, %s1091_s3 }
 0x11b   : > { %p766_p3 = scmp.lt.u32.totalorder %s764_s23, %s760_s9  ;;  %p768_p8 = scmp.lt.u32.totalorder %s760_s9, %s1039_s7 }
 0x11c   : > { %p762_p10 = pnand %p761_p7, %p1099_p11 }
 0x11d   : > { %p767_p9 = por %p766_p3, %p765_p1 }
 0x11e   : > { %p763_p12 = pneg %p762_p10 }
 0x11f   : > { %p769_p0 = por %p768_p8, %p767_p9 }
 0x121   : > { %p770_p6 = pnand %p769_p0, %p763_p12 }
 0x123   : > { %773 = shalt.err (!%p770_p6)
}
 0x124   : > { %s842_s29 = smov 128   ;;  %s843_s4 = smov 8  }
 0x125   : > { %639 = dma.vmem_to_hbm [thread:$0]  (%p1099_p11), %s1032_s30, 512, %s1039_s7, %s492_s18, %s842_s29, %s842_s29, %s843_s4  }
 0x126 PF: > { %s521_s15 = sand.u32 1, %s808_s12   ;;  %p1100_p13 = scmp.ne.s32.totalorder %s1096_s27, 0 }
 0x127   : > { %p1101_p2 = scmp.ge.s32.totalorder %s828_s17, 2  ;;  %s522_s5 = scalar_lea.sflag [#allocation4], %s521_s15 }
 0x129   : > { %p646_p5 = pnand %p1101_p2, %p1100_p13 }
 0x12b   : > { %803 = dma.done.wait (!%p646_p5), %s522_s5, 512  }
 0x12c   : > { %805 = vsyncadd (!%p646_p5), %s522_s5, 4294966784  ;;  %s19_s17 = sadd.s32 1, %s828_s17   ;;  %s1102_s12 = smov %s812_s13 }
 0x12d   : > { %p16_p4 = scmp.ge.s32.totalorder %s19_s17, 4   ;;  %s1103_s13 = smov %s816_s14 }
 0x12e   : > { %s1104_s14 = smov %s920_s26  ;;  %s1105_s15 = smov %s824_s16 }
 0x12f   : > { %s1106_s16 = smov %s1108_s20  ;;  %18 = sbr.rel (!%p16_p4) target bundleno = 6 (0x6), region = 80 }
 0x136   :  { %527 = vsyncpa [#allocation3], 1 }
 0x137   :  { %529 = vsyncpa [#allocation3 + $0x1], 1 }
 0x138   :  { %530 = vsyncpa [#allocation4], 1 }
 0x139   :  { %532 = vsyncpa [#allocation4 + $0x1], 1 }

</bundles_post_ra>
